<compile_context>
chip_gen: v6e
topology: v6e:2x2x1
jax: 0.10.0
libtpu: 0.0.40
codegen_flags: <defaults>
</compile_context>

<pallas_src>
import jax
import jax.numpy as jnp
from jax.experimental import pallas as pl
from jax.experimental.pallas import tpu as pltpu


def _qnet_kernel(s_agg_ref, s_node_ref, g_ref, b_ref, v_agg_ref, v_node_ref,
                 agg_ref, node_ref, out_ref):
    s_agg = s_agg_ref[0]
    s_node = s_node_ref[0]
    g = g_ref[0, 0]
    bias = b_ref[0]

    # weight_norm reconstruction on-chip: w = g * v / ||v||.
    # v is split into its two [1, D] halves by the wrapper so no vreg is split
    # at lane 64 here; this is ~1 vreg of XLU/EUP/VPU work per grid step and is
    # completely hidden under the per-step multi-MiB input DMA.
    va = v_agg_ref[...]                                               # [1, D]
    vn = v_node_ref[...]                                              # [1, D]
    nrm2 = (jnp.sum(va * va, axis=1, keepdims=True) +
            jnp.sum(vn * vn, axis=1, keepdims=True))                  # [1, 1]
    scale = g * jax.lax.rsqrt(nrm2)                                   # [1, 1]
    w_agg = scale * va                                                # [1, D]
    w_node = scale * vn                                               # [1, D]

    # relu(s * x) per stream == relu over the concat halves (elementwise), so
    # no in-kernel concat / lane re-shuffle is needed.  Inputs may be bf16.
    h_agg = jnp.maximum(s_agg * agg_ref[...].astype(jnp.float32), 0.0)
    h_node = jnp.maximum(s_node * node_ref[...].astype(jnp.float32), 0.0)

    # VPU multiply + XLU lane reduce replaces the 1-column MXU matvec.
    acc = jnp.sum(h_agg * w_agg + h_node * w_node, axis=-1, keepdims=True)
    out_ref[...] = (acc + bias).astype(out_ref.dtype)


def qnet_pallas(node_embed, agg_embed, s_agg, s_node, g, v, bias, *,
                tile_n=8192, vmem_limit_bytes=64 * 1024 * 1024):
    """node_embed, agg_embed: [N, D] (f32 or bf16); v: [1, 2D]; g: [1, 1];
    s_agg, s_node, bias: [1].  Returns [N, 1] f32."""
    N, D = node_embed.shape
    assert agg_embed.shape == (N, D)
    assert v.shape == (1, 2 * D)

    # Tile selection: large enough to amortize per-grid-step overhead, small
    # enough that (a) double-buffered VMEM stays well under every generation's
    # budget and (b) the "parallel" row axis keeps >= ~4 steps so v7x's two
    # TensorCores can split the grid and each still double-buffers.
    def _round_up(x, m):
        return ((x + m - 1) // m) * m

    tn = max(8, min(tile_n, _round_up(pl.cdiv(N, 4), 8)))
    grid = (pl.cdiv(N, tn),)   # ragged last tile handled in-kernel; no jnp.pad.

    # Tiny param-side slices (fused under jit); avoids an in-kernel lane-64
    # vreg split on every grid step.
    v_agg = v[:, :D]
    v_node = v[:, D:]

    smem = pl.BlockSpec(memory_space=pltpu.MemorySpace.SMEM)
    return pl.pallas_call(
        _qnet_kernel,
        out_shape=jax.ShapeDtypeStruct((N, 1), jnp.float32),
        grid=grid,
        in_specs=[
            smem,                                        # s_agg  [1]
            smem,                                        # s_node [1]
            smem,                                        # g      [1, 1]
            smem,                                        # bias   [1]
            pl.BlockSpec((1, D), lambda i: (0, 0)),      # v_agg  (weight_norm dir)
            pl.BlockSpec((1, D), lambda i: (0, 0)),      # v_node (weight_norm dir)
            pl.BlockSpec((tn, D), lambda i: (i, 0)),     # agg_embed row tile
            pl.BlockSpec((tn, D), lambda i: (i, 0)),     # node_embed row tile
        ],
        out_specs=pl.BlockSpec((tn, 1), lambda i: (i, 0)),
        compiler_params=pltpu.CompilerParams(
            dimension_semantics=("parallel",),
            vmem_limit_bytes=vmem_limit_bytes,
        ),
    )(s_agg, s_node, g, bias, v_agg, v_node, agg_embed, node_embed)


def init_qnet_params(key, embed_dim=64):
    """Deterministic synthetic init mirroring QNet.__init__ shapes/semantics."""
    ks = jax.random.split(key, 12)
    D2 = embed_dim * 2

    def xavier_uniform(k, shape):
        fan_out, fan_in = shape
        limit = (6.0 / (fan_in + fan_out)) ** 0.5
        return jax.random.uniform(k, shape, minval=-limit, maxval=limit,
                                  dtype=jnp.float32)

    def linear_bias(k, fan_in, shape):
        bound = 1.0 / (fan_in ** 0.5)
        return jax.random.uniform(k, shape, minval=-bound, maxval=bound,
                                  dtype=jnp.float32)

    # fc weights: xavier init, then weight_norm decomposition (g = ||w||, v = w).
    w1 = xavier_uniform(ks[6], (1, D2))
    w2 = xavier_uniform(ks[8], (1, D2))
    return dict(
        beta1=jax.random.uniform(ks[0], (D2, 1), dtype=jnp.float32),   # unused in forward
        beta2=jax.random.uniform(ks[1], (1,), dtype=jnp.float32),
        beta3=jax.random.uniform(ks[2], (1,), dtype=jnp.float32),
        theta1=jax.random.uniform(ks[3], (D2, 1), dtype=jnp.float32),  # unused in forward
        theta2=jax.random.uniform(ks[4], (1,), dtype=jnp.float32),
        theta3=jax.random.uniform(ks[5], (1,), dtype=jnp.float32),
        fc1_v=w1,
        fc1_g=jnp.linalg.norm(w1, axis=1, keepdims=True),
        fc1_b=linear_bias(ks[7], D2, (1,)),
        fc2_v=w2,
        fc2_g=jnp.linalg.norm(w2, axis=1, keepdims=True),
        fc2_b=linear_bias(ks[9], D2, (1,)),
    )


def qnet_forward(params, node_embed, agg_embed, role="critic"):
    # All parameter math (weight_norm, scales, bias) is fused into the kernel;
    # the wrapper only routes the parameter set and splits v into its halves.
    if role == "critic":
        s_agg, s_node = params["beta2"], params["beta3"]
        g, v, b = params["fc1_g"], params["fc1_v"], params["fc1_b"]
    else:
        s_agg, s_node = params["theta2"], params["theta3"]
        g, v, b = params["fc2_g"], params["fc2_v"], params["fc2_b"]
    return qnet_pallas(node_embed, agg_embed, s_agg, s_node, g, v, b)


def qnet_reference(params, node_embed, agg_embed, role="critic"):
    """Pure-JAX reference of the PyTorch forward (elementwise contraction so the
    check is not polluted by TPU default matmul precision)."""
    if role == "critic":
        s_agg, s_node = params["beta2"][0], params["beta3"][0]
        g, v, b = params["fc1_g"], params["fc1_v"], params["fc1_b"]
    else:
        s_agg, s_node = params["theta2"][0], params["theta3"][0]
        g, v, b = params["fc2_g"], params["fc2_v"], params["fc2_b"]
    w = g * v / jnp.linalg.norm(v, axis=1, keepdims=True)              # [1, 2D]
    combined = jnp.concatenate(
        [s_agg * agg_embed.astype(jnp.float32),
         s_node * node_embed.astype(jnp.float32)], axis=1)             # [N, 2D]
    h = jnp.maximum(combined, 0.0)
    return jnp.sum(h * w, axis=1, keepdims=True) + b


if __name__ == "__main__":
    embed_dim = 64
    N = 10  # not a multiple of the tile -> exercises the ragged (no-pad) tail path
    key = jax.random.PRNGKey(0)
    kp, kn, ka = jax.random.split(key, 3)

    params = init_qnet_params(kp, embed_dim=embed_dim)
    node_embed = jax.random.normal(kn, (N, embed_dim), dtype=jnp.float32)
    agg_embed = jax.random.normal(ka, (N, embed_dim), dtype=jnp.float32)

    ok = True

    # f32 embeddings, both roles.
    for role in ("critic", "actor"):
        out = jax.block_until_ready(
            qnet_forward(params, node_embed, agg_embed, role=role))
        ref = qnet_reference(params, node_embed, agg_embed, role=role)
        assert out.shape == (N, 1)
        if not jnp.allclose(out, ref, atol=1e-5, rtol=1e-5):
            ok = False

    # bf16 embeddings (recommended upstream on v6e/v7x: halves HBM read bytes;
    # in-kernel compute stays f32).  Compared against the f32 reference run on
    # the bf16-rounded inputs, so only accumulation-order noise remains.
    node_bf16 = node_embed.astype(jnp.bfloat16)
    agg_bf16 = agg_embed.astype(jnp.bfloat16)
    out_bf16 = jax.block_until_ready(
        qnet_forward(params, node_bf16, agg_bf16, role="critic"))
    ref_bf16 = qnet_reference(params, node_bf16.astype(jnp.float32),
                              agg_bf16.astype(jnp.float32), role="critic")
    if not jnp.allclose(out_bf16, ref_bf16, atol=1e-4, rtol=1e-4):
        ok = False

    if ok:
        print("KERNEL_OK")
</pallas_src>

<mosaic_0001>
module attributes {stable_mosaic.version = 11 : i64} {
  func.func @_qnet_kernel(%arg0: i32, %arg1: memref<1xf32, #tpu.memory_space<smem>>, %arg2: memref<1xf32, #tpu.memory_space<smem>>, %arg3: memref<1x1xf32, #tpu.memory_space<smem>>, %arg4: memref<1xf32, #tpu.memory_space<smem>>, %arg5: memref<1x64xf32, #tpu.memory_space<vmem>>, %arg6: memref<1x64xf32, #tpu.memory_space<vmem>>, %arg7: memref<8x64xf32, #tpu.memory_space<vmem>>, %arg8: memref<8x64xf32, #tpu.memory_space<vmem>>, %arg9: memref<8x1xf32, #tpu.memory_space<vmem>>) attributes {dimension_semantics = [#tpu.dimension_semantics<parallel>], iteration_bounds = array<i64: 2>, scalar_prefetch = 0 : i64, scratch_operands = 0 : i64, tpu.core_type = #tpu.core_type<tc>, window_params = [{transform_indices = @transform_0, window_bounds = array<i64: 1>}, {transform_indices = @transform_1, window_bounds = array<i64: 1>}, {transform_indices = @transform_2, window_bounds = array<i64: 1, 1>}, {transform_indices = @transform_3, window_bounds = array<i64: 1>}, {pipeline_mode = #tpu.pipeline_mode<synchronous>, transform_indices = @transform_4, window_bounds = array<i64: 1, 64>}, {pipeline_mode = #tpu.pipeline_mode<synchronous>, transform_indices = @transform_5, window_bounds = array<i64: 1, 64>}, {transform_indices = @transform_6, window_bounds = array<i64: 8, 64>}, {transform_indices = @transform_7, window_bounds = array<i64: 8, 64>}, {transform_indices = @transform_8, window_bounds = array<i64: 8, 1>}]} {
    %c0 = arith.constant 0 : index
    %0 = memref.load %arg1[%c0] : memref<1xf32, #tpu.memory_space<smem>>
    %c0_0 = arith.constant 0 : index
    %1 = memref.load %arg2[%c0_0] : memref<1xf32, #tpu.memory_space<smem>>
    %c0_1 = arith.constant 0 : index
    %c0_2 = arith.constant 0 : index
    %2 = memref.load %arg3[%c0_1, %c0_2] : memref<1x1xf32, #tpu.memory_space<smem>>
    %c0_3 = arith.constant 0 : index
    %3 = memref.load %arg4[%c0_3] : memref<1xf32, #tpu.memory_space<smem>>
    %c0_4 = arith.constant 0 : index
    %c0_5 = arith.constant 0 : index
    %4 = vector.load %arg5[%c0_4, %c0_5] : memref<1x64xf32, #tpu.memory_space<vmem>>, vector<1x64xf32>
    %c0_6 = arith.constant 0 : index
    %c0_7 = arith.constant 0 : index
    %5 = vector.load %arg6[%c0_6, %c0_7] : memref<1x64xf32, #tpu.memory_space<vmem>>, vector<1x64xf32>
    %6 = arith.mulf %4, %4 : vector<1x64xf32>
    %cst = arith.constant dense<0.000000e+00> : vector<1xf32>
    %7 = vector.multi_reduction <add>, %6, %cst [1] : vector<1x64xf32> to vector<1xf32>
    %8 = vector.shape_cast %7 : vector<1xf32> to vector<1x1xf32>
    %9 = arith.mulf %5, %5 : vector<1x64xf32>
    %cst_8 = arith.constant dense<0.000000e+00> : vector<1xf32>
    %10 = vector.multi_reduction <add>, %9, %cst_8 [1] : vector<1x64xf32> to vector<1xf32>
    %11 = vector.shape_cast %10 : vector<1xf32> to vector<1x1xf32>
    %12 = arith.addf %8, %11 : vector<1x1xf32>
    %13 = math.rsqrt %12 : vector<1x1xf32>
    %14 = vector.broadcast %2 : f32 to vector<1x1xf32>
    %15 = arith.mulf %14, %13 : vector<1x1xf32>
    %16 = vector.broadcast %15 : vector<1x1xf32> to vector<1x64xf32>
    %17 = arith.mulf %16, %4 : vector<1x64xf32>
    %18 = vector.broadcast %15 : vector<1x1xf32> to vector<1x64xf32>
    %19 = arith.mulf %18, %5 : vector<1x64xf32>
    %c0_9 = arith.constant 0 : index
    %c0_10 = arith.constant 0 : index
    %20 = vector.load %arg7[%c0_9, %c0_10] : memref<8x64xf32, #tpu.memory_space<vmem>>, vector<8x64xf32>
    %21 = vector.broadcast %0 : f32 to vector<8x64xf32>
    %22 = arith.mulf %21, %20 : vector<8x64xf32>
    %cst_11 = arith.constant 0.000000e+00 : f32
    %23 = vector.broadcast %cst_11 : f32 to vector<8x64xf32>
    %24 = arith.maximumf %22, %23 : vector<8x64xf32>
    %c0_12 = arith.constant 0 : index
    %c0_13 = arith.constant 0 : index
    %25 = vector.load %arg8[%c0_12, %c0_13] : memref<8x64xf32, #tpu.memory_space<vmem>>, vector<8x64xf32>
    %26 = vector.broadcast %1 : f32 to vector<8x64xf32>
    %27 = arith.mulf %26, %25 : vector<8x64xf32>
    %cst_14 = arith.constant 0.000000e+00 : f32
    %28 = vector.broadcast %cst_14 : f32 to vector<8x64xf32>
    %29 = arith.maximumf %27, %28 : vector<8x64xf32>
    %30 = vector.broadcast %17 : vector<1x64xf32> to vector<8x64xf32>
    %31 = arith.mulf %24, %30 : vector<8x64xf32>
    %32 = vector.broadcast %19 : vector<1x64xf32> to vector<8x64xf32>
    %33 = arith.mulf %29, %32 : vector<8x64xf32>
    %34 = arith.addf %31, %33 : vector<8x64xf32>
    %cst_15 = arith.constant dense<0.000000e+00> : vector<8xf32>
    %35 = vector.multi_reduction <add>, %34, %cst_15 [1] : vector<8x64xf32> to vector<8xf32>
    %36 = vector.shape_cast %35 : vector<8xf32> to vector<8x1xf32>
    %37 = vector.broadcast %3 : f32 to vector<8x1xf32>
    %38 = arith.addf %36, %37 : vector<8x1xf32>
    %c0_16 = arith.constant 0 : index
    %c0_17 = arith.constant 0 : index
    %39 = vector.load %arg9[%c0_16, %c0_17] : memref<8x1xf32, #tpu.memory_space<vmem>>, vector<8x1xf32>
    tpu.vector_store %arg9[%c0_16, %c0_17], %38 {strides = array<i32>} : memref<8x1xf32, #tpu.memory_space<vmem>>, vector<8x1xf32>,
    return
  }
  func.func @transform_0(%arg0: i32) -> i32 {
    %c0_i32 = arith.constant 0 : i32
    %c0_i32_0 = arith.constant 0 : i32
    return %c0_i32 : i32
  }
  func.func @transform_1(%arg0: i32) -> i32 {
    %c0_i32 = arith.constant 0 : i32
    %c0_i32_0 = arith.constant 0 : i32
    return %c0_i32 : i32
  }
  func.func @transform_2(%arg0: i32) -> (i32, i32) {
    %c0_i32 = arith.constant 0 : i32
    %c0_i32_0 = arith.constant 0 : i32
    %c0_i32_1 = arith.constant 0 : i32
    return %c0_i32, %c0_i32_0 : i32, i32
  }
  func.func @transform_3(%arg0: i32) -> i32 {
    %c0_i32 = arith.constant 0 : i32
    %c0_i32_0 = arith.constant 0 : i32
    return %c0_i32 : i32
  }
  func.func @transform_4(%arg0: i32) -> (i32, i32) {
    %c0_i32 = arith.constant 0 : i32
    %c0_i32_0 = arith.constant 0 : i32
    %c0_i32_1 = arith.constant 0 : i32
    return %c0_i32, %c0_i32_0 : i32, i32
  }
  func.func @transform_5(%arg0: i32) -> (i32, i32) {
    %c0_i32 = arith.constant 0 : i32
    %c0_i32_0 = arith.constant 0 : i32
    %c0_i32_1 = arith.constant 0 : i32
    return %c0_i32, %c0_i32_0 : i32, i32
  }
  func.func @transform_6(%arg0: i32) -> (i32, i32) {
    %c0_i32 = arith.constant 0 : i32
    %c0_i32_0 = arith.constant 0 : i32
    return %arg0, %c0_i32 : i32, i32
  }
  func.func @transform_7(%arg0: i32) -> (i32, i32) {
    %c0_i32 = arith.constant 0 : i32
    %c0_i32_0 = arith.constant 0 : i32
    return %arg0, %c0_i32 : i32, i32
  }
  func.func @transform_8(%arg0: i32) -> (i32, i32) {
    %c0_i32 = arith.constant 0 : i32
    %c0_i32_0 = arith.constant 0 : i32
    return %arg0, %c0_i32 : i32, i32
  }
}

</mosaic_0001>

<bundles_post_ra>
// kernel: tpu_custom_call.1
= control target key start
LH: loop header
LB: loop body
LE: loop exit
PB: predicated region body
PF: predicated region fallthrough
CT: control target
= control target key end

     0   :  { %s870_s0 = inlined_call_operand.<no memory space> [shape: f32[1], index: 0, kind: input, shape index: {}]   ;;  %s871_s1 = inlined_call_operand.<no memory space> [shape: f32[1], index: 1, kind: input, shape index: {}]   ;;  %s872_s2 = inlined_call_operand.<no memory space> [shape: f32[1,1], index: 2, kind: input, shape index: {}]   ;;  %s873_s4 = inlined_call_operand.vmem [shape: f32[1,64], index: 4, kind: input, shape index: {}]   ;;  %s874_s5 = inlined_call_operand.vmem [shape: f32[1,64], index: 5, kind: input, shape index: {}]   ;;  %s875_s6 = inlined_call_operand.hbm [shape: f32[10,64], index: 6, kind: input, shape index: {}]   ;;  %s876_s7 = inlined_call_operand.hbm [shape: f32[10,64], index: 7, kind: input, shape index: {}]   ;;  %s877_s8 = inlined_call_operand.vmem [shape: f32[10,1], index: 8, kind: output, shape index: {}]   ;;  %s878_s3 = inlined_call_operand.<no memory space> [shape: f32[1], index: 3, kind: input, shape index: {}]  }
   0x1   :  { %13 = sst [smem:[#allocation2]] %s870_s0 }
   0x2   :  { %14 = sst [smem:[#allocation3]] %s871_s1 }
   0x3   :  { %15 = sst [smem:[#allocation4]] %s872_s2 }
   0x4   :  { %16 = sst [smem:[#allocation5]] %s878_s3 }
   0x5   :  { %17 = vsyncpa [#allocation7], 0 }
   0x6   :  { %19 = vsyncpa [#allocation7 + $0x1], 0 }
   0x7   :  { %20 = vsyncpa [#allocation9], 0 }
   0x8   :  { %22 = vsyncpa [#allocation9 + $0x1], 0  ;;  %s712_s13 = smov 0   ;;  %s714_s14 = smov 0  }
   0x9   :  { %s716_s0 = smov 0   ;;  %s718_s15 = smov 0  }
   0xa LB: > { %s731_s1 = sadd.s32 4294967295, %s651_s15   ;;  %s734_s2 = sadd.s32 1, %s651_s15   ;;  %s651_s15 = sphi %s718_s15, %s890_s15   ;;  %s647_s0 = sphi %s716_s0, %s889_s0   ;;  %s643_s14 = sphi %s714_s14, %s888_s14   ;;  %s639_s13 = sphi %s712_s13, %s887_s13  }
   0xb   : > { %s158_s3 = ssub.s32 %s651_s15, %s734_s2  ;;  %s161_s16 = sadd.s32 1, %s647_s0 }
   0xc   : > { %p159_p0 = scmp.eq.s32.totalorder %s158_s3, 0  ;;  %p168_p1 = scmp.ne.s32.totalorder %s647_s0, %s643_s14 }
   0xd   : > { %p169_p2 = scmp.eq.s32.totalorder %s651_s15, 0  ;;  %p174_p3 = scmp.ne.s32.totalorder %s643_s14, %s639_s13 }
   0xe   : > { %s744_s17 = scalar_select %p159_p0, %s647_s0, %s161_s16  }
   0xf   : > { %p170_p4 = por %p169_p2, %p168_p1  ;;  %p175_p5 = scmp.eq.s32.totalorder %s731_s1, 0 }
  0x10   : > { %p522_p6 = scmp.lt.s32.totalorder %s651_s15, 2  ;;  %s753_s19 = sand.u32 1, %s647_s0  }
  0x11   : > { %p748_p7 = por %p175_p5, %p174_p3  ;;  %s501_s20 = sshll.u32 %s753_s19, 3 }
  0x12   : > { %s502_s21 = sshll.u32 %s651_s15, 7  ;;  %s272_s25 = scalar_lea.vmem [#allocation6], %s501_s20 }
  0x13   : > { %s880_s18 = scalar_select %p748_p7, 1, 0 }
  0x14   : > { %s762_s24 = scalar_lea.hbm %s875_s6, %s502_s21  ;;  %s279_s26 = sshll.u32 %s272_s25, 4  ;;  %s766_s26 = int_to_ptr.vmem [resolvable:$true] %s279_s26 }
  0x15   : > { %p768_p8 = pnand %p522_p6, %p170_p4  ;;  %s269_s28 = scalar_lea.sflag [#allocation7], %s753_s19 }
  0x16   : > { %s557_s29 = scalar_lea.hbm %s762_s24, 128  ;;  %s562_s10 = scalar_lea.hbm %s875_s6, 256 }
  0x17   : > { %p558_p11 = scmp.ne.s32.totalorder %s762_s24, %s557_s29  ;;  %p559_p12 = pneg %p768_p8 }
  0x18   : > { %p563_p1 = scmp.lt.s32.totalorder %s762_s24, %s875_s6  ;;  %p564_p2 = scmp.lt.s32.totalorder %s562_s10, %s557_s29 }
  0x19   : > { %p560_p13 = pnand %p559_p12, %p558_p11 }
  0x1a   : > { %p565_p3 = por %p564_p2, %p563_p1 }
  0x1b   : > { %p561_p0 = pneg %p560_p13 }
  0x1d   : > { %p566_p4 = pnand %p565_p3, %p561_p0 }
  0x1f   : > { %569 = shalt.err (!%p566_p4)
}
  0x20   : > { %s570_s13 = scalar_lea.vmem %s766_s26, 128  ;;  %s653_s3 = smov [#allocation6]  }
  0x21   : > { %p571_p5 = scmp.ne.s32.totalorder %s766_s26, %s570_s13  ;;  %s575_s16 = sshll.u32 %s653_s3, 4  ;;  %s576_s16 = int_to_ptr.vmem [resolvable:$false] %s575_s16 }
  0x22   : > { %s577_s22 = scalar_lea.vmem %s576_s16, 256  ;;  %p578_p13 = scmp.lt.s32.totalorder %s766_s26, %s576_s16 }
  0x23   : > { %p573_p6 = pnand %p571_p5, %p559_p12  ;;  %p579_p9 = scmp.lt.s32.totalorder %s577_s22, %s570_s13 }
  0x25   : > { %p574_p11 = pneg %p573_p6  ;;  %p580_p10 = por %p579_p9, %p578_p13 }
  0x27   : > { %p581_p1 = pnand %p580_p10, %p574_p11 }
  0x29   : > { %584 = shalt.err (!%p581_p1)
}
  0x2a   : > { %518 = dma.hbm_to_vmem [thread:$0]  (!%p768_p8), %s762_s24, 128, %s766_s26, %s269_s28  }
  0x2b   : > { %p882_p0 = scmp.lt.s32.totalorder %s651_s15, 3  ;;  %p883_p2 = scmp.ge.s32.totalorder %s651_s15, 1 }
  0x2c   : > { %s812_s30 = scalar_lea.hbm %s876_s7, %s502_s21  ;;  %s290_s9 = scalar_lea.vmem [#allocation8], %s501_s20 }
  0x2d   : > { %p803_p3 = pnand %p883_p2, %p882_p0  ;;  %s297_s10 = sshll.u32 %s290_s9, 4  ;;  %s298_s10 = int_to_ptr.vmem [resolvable:$true] %s297_s10 }
  0x2e   : > { %s287_s24 = scalar_lea.sflag [#allocation9], %s753_s19  ;;  %s585_s26 = scalar_lea.hbm %s812_s30, 128 }
  0x2f   : > { %s884_s23 = scalar_select %p803_p3, 1, 0 }
  0x30   : > { %p586_p9 = scmp.ne.s32.totalorder %s812_s30, %s585_s26  ;;  %s590_s11 = scalar_lea.hbm %s876_s7, 256 }
  0x31   : > { %p591_p5 = scmp.lt.s32.totalorder %s812_s30, %s876_s7  ;;  %p592_p6 = scmp.lt.s32.totalorder %s590_s11, %s585_s26 }
  0x32   : > { %p588_p10 = pnand %p586_p9, %p559_p12 }
  0x33   : > { %p593_p11 = por %p592_p6, %p591_p5 }
  0x34   : > { %p589_p4 = pneg %p588_p10 }
  0x36   : > { %p594_p13 = pnand %p593_p11, %p589_p4 }
  0x38   : > { %597 = shalt.err (!%p594_p13)
}
  0x39   : > { %s598_s20 = scalar_lea.vmem %s298_s10, 128  ;;  %s654_s19 = smov [#allocation8]  }
  0x3a   : > { %p599_p1 = scmp.ne.s32.totalorder %s298_s10, %s598_s20  ;;  %s603_s13 = sshll.u32 %s654_s19, 4  ;;  %s604_s13 = int_to_ptr.vmem [resolvable:$false] %s603_s13 }
  0x3b   : > { %s605_s3 = scalar_lea.vmem %s604_s13, 256  ;;  %p606_p9 = scmp.lt.s32.totalorder %s298_s10, %s604_s13 }
  0x3c   : > { %p601_p0 = pnand %p599_p1, %p559_p12  ;;  %p607_p10 = scmp.lt.s32.totalorder %s605_s3, %s598_s20 }
  0x3e   : > { %p602_p2 = pneg %p601_p0  ;;  %p608_p7 = por %p607_p10, %p606_p9 }
  0x40   : > { %p609_p3 = pnand %p608_p7, %p602_p2 }
  0x42   : > { %612 = shalt.err (!%p609_p3)
}
  0x43   : > { %521 = dma.hbm_to_vmem [thread:$0]  (!%p768_p8), %s812_s30, 128, %s298_s10, %s287_s24  }
  0x44   : > { %p885_p4 = scmp.ne.s32.totalorder %s884_s23, 0 }
  0x45   : > { %s308_s16 = sand.u32 (!%p885_p4), 1, %s643_s14   ;;  %p886_p12 = scmp.ne.s32.totalorder (!%p885_p4), %s880_s18, 0 }
  0x46   : > { %306 = sbr.rel (%p885_p4) target bundleno = 392 (0x188), region = 52  ;;  %s506_s22 = sshll.u32 (!%p885_p4), %s308_s16, 3 }
  0x47   : > { %s309_s25 = scalar_lea.sflag (!%p885_p4), [#allocation7], %s308_s16  ;;  %s312_s29 = scalar_lea.vmem (!%p885_p4), [#allocation6], %s506_s22 }
  0x4b   : > { %630 = dma.done.wait (%p886_p12), %s309_s25, 128  }
  0x4c   : > { %632 = vsyncadd (%p886_p12), %s309_s25, 4294967168  ;;  %s318_s9 = scalar_lea.sflag [#allocation9], %s308_s16  ;;  %s321_s26 = scalar_lea.vmem [#allocation8], %s506_s22 }
  0x4d   : > { %634 = dma.done.wait (%p886_p12), %s318_s9, 128  }
  0x4e   : > { %636 = vsyncadd (%p886_p12), %s318_s9, 4294967168  ;;  %v366_v0 = vld [vmem:[%s873_s4] sm:$0x1]  ;;  %vm369_vm0 = vcmask 516096   ;;  %s362_s18 = sld [smem:[#allocation2]]  ;;  %v391_v9 = vlaneseq  ;;  %v387_v12 = vld [vmem:[%s321_s26] sm:$0xff] }
  0x4f   : > { %v367_v1 = vld [vmem:[%s874_s5] sm:$0x1]  ;;  %v368_v2 = vmul.f32 %v366_v0, %v366_v0  ;;  %s363_s24 = sld [smem:[#allocation3]]  ;;  %vm402_vm1 = vcmask 523264   ;;  %p358_p7 = scmp.lt.s32.totalorder %s731_s1, 1  ;;  %vm408_vm2 = vcmask 7168  }
  0x50   : > { %v373_v3 = vmul.f32 %v367_v1, %v367_v1  ;;  %s364_s15 = sld [smem:[#allocation4]]  ;;  %v383_v10 = vld [vmem:[%s312_s29] sm:$0xff]  ;;  %v392_v14 = vshrl.u32 %v391_v9, 7 }
  0x51   : > { %v370_v4 = vsel %vm369_vm0, %v368_v2, 0.0  ;;  %s365_s28 = sld [smem:[#allocation5]]  ;;  %s892_s1 = smov (!%p358_p7, %s731_s1), 1 }
  0x52   : > { %371 = vadd.xlane.f32.xlu0 %v370_v4  ;;  %v374_v5 = vsel %vm369_vm0, %v373_v3, 0.0  ;;  %v393_v20 = vsub.s32 0, %v392_v14  ;;  %s508_s11 = sshll.u32 %s892_s1, 3 }
  0x53   : > { %s361_s20 = scalar_lea.vmem %s877_s8, %s508_s11 }
  0x54   : > { %v384_v11 = vstv %s362_s18 }
  0x55   : > { %v388_v13 = vstv %s363_s24  ;;  %v385_v16 = vmul.f32 %v384_v11, %v383_v10 }
  0x56   : > { %375 = vadd.xlane.f32.xlu0 %v374_v5  ;;  %v379_v15 = vstv %s364_s15  ;;  %v389_v17 = vmul.f32 %v388_v13, %v387_v12 }
  0x57   : > { %v386_v23 = vmax.f32 %v385_v16, 0.0  ;;  %v406_v31 = vstv %s365_s28 }
  0x58   : > { %v390_v24 = vmax.f32 %v389_v17, 0.0 }
  0xdb   : > { %v372_v6 = vpop.xlane.xlu0 %371 }
  0xdf   : > { %v376_v7 = vpop.xlane.xlu0 %375 }
  0xe0   : > { %v377_v8 = vadd.f32 %v376_v7, %v372_v6 }
  0xe2   : > { %555 = vrsqrt.f32 %v377_v8 }
  0xef   : > { %v556_v18 = vpop.eup %555 }
  0xf0   : > { %v380_v19 = vmul.f32 %v556_v18, %v379_v15 }
  0xf2   : > { %v381_v21 = vmul.f32 %v380_v19, %v366_v0  ;;  %v382_v22 = vmul.f32 %v380_v19, %v367_v1 }
  0xf4   : > { %v394_v25 = vrot.slane %v381_v21, %v393_v20  ;;  %v399_v26 = vrot.slane %v382_v22, %v393_v20 }
  0xf6   : > { %v395_v27 = vmul.f32 %v394_v25, %v386_v23  ;;  %v400_v28 = vmul.f32 %v399_v26, %v390_v24 }
  0xf8   : > { %v401_v29 = vadd.f32 %v400_v28, %v395_v27 }
  0xfa   : > { %v403_v30 = vsel %vm402_vm1, %v401_v29, 0.0 }
  0xfb   : > { %404 = vadd.xlane.f32.xlu1 %v403_v30 }
 0x184   : > { %v405_v32 = vpop.xlane.xlu1 %404 }
 0x185   : > { %v407_v33 = vadd.f32 %v406_v31, %v405_v32 }
 0x187   : > { %409 = vst.msk [vmem:[%s361_s20] sm:$0xff] %vm408_vm2, %v407_v33 }
 0x188 PF: > { %p25_p8 = scmp.ge.s32.totalorder %s734_s2, 4   ;;  %s887_s13 = smov %s643_s14 }
 0x189   : > { %s888_s14 = smov %s647_s0  ;;  %s889_s0 = smov %s744_s17 }
 0x18a   : > { %s890_s15 = smov %s734_s2  ;;  %27 = sbr.rel (!%p25_p8) target bundleno = 10 (0xa), region = 105 }
 0x18f   :  { %429 = vsyncpa [#allocation7], 1 }
 0x190   :  { %431 = vsyncpa [#allocation7 + $0x1], 1 }
 0x191   :  { %432 = vsyncpa [#allocation9], 1 }
 0x192   :  { %434 = vsyncpa [#allocation9 + $0x1], 1 }

</bundles_post_ra>
